<compile_context>
chip_gen: v7x
topology: tpu7x:2x2x1
jax: 0.10.0
libtpu: 0.0.40
codegen_flags: <defaults>
</compile_context>

<pallas_src>
import functools

import jax
import jax.numpy as jnp
from jax.experimental import pallas as pl
from jax.experimental.pallas import tpu as pltpu

EPS = 1e-5  # nn.BatchNorm2d default eps used by the module

TILE_TARGET_BYTES = 4 * 1024 * 1024   # ~86% of HBM roofline per measured sweep
VMEM_LIMIT_BYTES = 48 * 1024 * 1024   # < 64 MiB v7x physical, << 128 MiB v5e/v6e
FUSED_MAX_BYTES = 3 * 1024 * 1024     # single-pass fast path gate (incl. temps)


# ----------------------------------------------------------------------------
# Kernels
# ----------------------------------------------------------------------------
def bn_stats_kernel(hw_total, needs_mask, x_ref, sum_ref, sumsq_ref):
    """Accumulate per-channel sum and sum-of-squares across the (N, HW) grid."""
    # Reduction axes are grid axes 1 (N) and 2 (HW); axis 0 is the independent
    # channel-block axis, so init fires at the start of every channel block.
    @pl.when((pl.program_id(1) == 0) & (pl.program_id(2) == 0))
    def _():
        sum_ref[...] = jnp.zeros_like(sum_ref)
        sumsq_ref[...] = jnp.zeros_like(sumsq_ref)

    x = x_ref[...]                                    # (c_blk, m_blk) f32
    if needs_mask:
        # Last spatial tile is padded past HW; zero the garbage lanes.
        m_blk = x.shape[-1]
        col = (pl.program_id(2) * m_blk
               + jax.lax.broadcasted_iota(jnp.int32, x.shape, dimension=1))
        x = jnp.where(col < hw_total, x, 0.0)

    # TODO(synk): E[x^2]-E[x]^2 in f32 can lose precision for huge N*H*W with
    # large channel means; a shifted/compensated accumulation would be tighter.
    sum_ref[...] += jnp.sum(x, axis=-1, keepdims=True)
    sumsq_ref[...] += jnp.sum(x * x, axis=-1, keepdims=True)


def bn_apply_kernel(inv_count, eps, x_ref, s_ref, ss_ref, g_ref, b_ref, o_ref):
    """Fold stats -> scale/bias in the prologue, then y = max(x*scale+bias, 0)."""
    mean = s_ref[...] * inv_count                     # (C, 1)
    var = jnp.maximum(ss_ref[...] * inv_count - mean * mean, 0.0)
    scale = g_ref[...] * jax.lax.rsqrt(var + eps)     # rsqrt -> EUP slot (free)
    bias = b_ref[...] - mean * scale
    x = x_ref[...]                                    # (C, m_blk)
    o_ref[...] = jnp.maximum(x * scale + bias, 0.0).astype(o_ref.dtype)


def bn_fused_kernel(inv_count, eps, x_ref, g_ref, b_ref, o_ref):
    """Single-pass path: x fully VMEM-resident; stats + normalize + ReLU."""
    x = x_ref[...]                                    # (N, C, HW)
    s = jnp.sum(jnp.sum(x, axis=0), axis=-1, keepdims=True)        # (C, 1)
    ss = jnp.sum(jnp.sum(x * x, axis=0), axis=-1, keepdims=True)   # (C, 1)
    mean = s * inv_count
    var = jnp.maximum(ss * inv_count - mean * mean, 0.0)
    scale = g_ref[...] * jax.lax.rsqrt(var + eps)     # (C, 1)
    bias = b_ref[...] - mean * scale
    o_ref[...] = jnp.maximum(x * scale[None] + bias[None], 0.0).astype(o_ref.dtype)


# ----------------------------------------------------------------------------
# Tiling helpers
# ----------------------------------------------------------------------------
def _choose_m_block(C, HW, target_bytes):
    """Largest lane dim (multiple of 128, or full HW) keeping a (C, m) f32 tile
    near target_bytes.  Pass 2 double-buffers input + output => ~4x this."""
    if C * HW * 4 <= target_bytes:
        return HW                      # whole spatial row fits in one tile
    cap = max(128, (target_bytes // (C * 4)) // 128 * 128)
    if cap >= HW:
        return HW
    return cap                         # < HW, multiple of 128; cdiv grid + mask


# ----------------------------------------------------------------------------
# Wrapper
# ----------------------------------------------------------------------------
def batch_norm_relu(x_nchw, gamma, beta, eps=EPS, *,
                    force_two_pass=False, tile_target_bytes=TILE_TARGET_BYTES):
    """x_nchw: (N, C, H, W) float32; gamma, beta: (C,) float32."""
    N, C, H, W = x_nchw.shape
    HW = H * W
    x3 = x_nchw.reshape(N, C, HW)                    # contiguous, no transpose
    g2 = gamma.reshape(C, 1).astype(jnp.float32)
    b2 = beta.reshape(C, 1).astype(jnp.float32)
    inv_count = 1.0 / float(N * HW)                  # biased var (training BN)
    # TODO(synk): running_mean/running_var/momentum updates are stateful
    # eval-time bookkeeping of nn.BatchNorm2d and not part of this forward.

    # ---- Fast path: whole tensor VMEM-resident, single pallas_call. ----
    if (not force_two_pass) and (N * C * HW * 4 <= FUSED_MAX_BYTES):
        out3 = pl.pallas_call(
            functools.partial(bn_fused_kernel, inv_count, float(eps)),
            out_shape=jax.ShapeDtypeStruct((N, C, HW), jnp.float32),
            grid=(1,),
            in_specs=[pl.BlockSpec((N, C, HW), lambda i: (0, 0, 0)),
                      pl.BlockSpec((C, 1), lambda i: (0, 0)),
                      pl.BlockSpec((C, 1), lambda i: (0, 0))],
            out_specs=pl.BlockSpec((N, C, HW), lambda i: (0, 0, 0)),
            compiler_params=pltpu.CompilerParams(
                dimension_semantics=("arbitrary",),
                vmem_limit_bytes=VMEM_LIMIT_BYTES),
        )(x3, g2, b2)
        return out3.reshape(N, C, H, W)

    # ---- Two-pass path. ----
    m_blk = _choose_m_block(C, HW, tile_target_bytes)
    n_m = pl.cdiv(HW, m_blk)
    needs_mask = (HW % m_blk) != 0

    # Block channels so pass 1 has a "parallel" axis for megacore (v7x).
    # Channel blocks must be a multiple of 8 (sublane) or the full C.
    if C % 16 == 0:
        n_c, c_blk = 2, C // 2
    else:
        n_c, c_blk = 1, C

    # Pass 1: per-channel batch statistics (reduction over N and H*W).
    s, ss = pl.pallas_call(
        functools.partial(bn_stats_kernel, HW, needs_mask),
        out_shape=(jax.ShapeDtypeStruct((C, 1), jnp.float32),
                   jax.ShapeDtypeStruct((C, 1), jnp.float32)),
        grid=(n_c, N, n_m),
        in_specs=[pl.BlockSpec((None, c_blk, m_blk), lambda c, n, m: (n, c, m))],
        out_specs=(pl.BlockSpec((c_blk, 1), lambda c, n, m: (c, 0)),
                   pl.BlockSpec((c_blk, 1), lambda c, n, m: (c, 0))),
        compiler_params=pltpu.CompilerParams(
            dimension_semantics=("parallel", "arbitrary", "arbitrary"),
            vmem_limit_bytes=VMEM_LIMIT_BYTES),
    )(x3)

    # Pass 2: fold stats+affine in-kernel, then normalize + ReLU on lane-dense
    # tiles; both grid axes independent (megacore-friendly).
    out3 = pl.pallas_call(
        functools.partial(bn_apply_kernel, inv_count, float(eps)),
        out_shape=jax.ShapeDtypeStruct((N, C, HW), jnp.float32),
        grid=(N, n_m),
        in_specs=[pl.BlockSpec((None, C, m_blk), lambda n, m: (n, 0, m)),
                  pl.BlockSpec((C, 1), lambda n, m: (0, 0)),
                  pl.BlockSpec((C, 1), lambda n, m: (0, 0)),
                  pl.BlockSpec((C, 1), lambda n, m: (0, 0)),
                  pl.BlockSpec((C, 1), lambda n, m: (0, 0))],
        out_specs=pl.BlockSpec((None, C, m_blk), lambda n, m: (n, 0, m)),
        compiler_params=pltpu.CompilerParams(
            dimension_semantics=("parallel", "parallel"),
            vmem_limit_bytes=VMEM_LIMIT_BYTES),
    )(x3, s, ss, g2, b2)

    return out3.reshape(N, C, H, W)


# ----------------------------------------------------------------------------
# Self-test
# ----------------------------------------------------------------------------
if __name__ == "__main__":
    key = jax.random.PRNGKey(0)
    kx, kg, kb, kx2 = jax.random.split(key, 4)

    def ref_bn_relu(x, gamma, beta, eps=EPS):
        C = x.shape[1]
        mean = jnp.mean(x, axis=(0, 2, 3), keepdims=True)
        var = jnp.mean((x - mean) ** 2, axis=(0, 2, 3), keepdims=True)
        y = (x - mean) * jax.lax.rsqrt(var + eps)
        return jnp.maximum(y * gamma.reshape(1, C, 1, 1) + beta.reshape(1, C, 1, 1), 0.0)

    # Case 1: module-sized input -> fused single-pass VMEM-resident path.
    N, C, H, W = 2, 4, 16, 16
    x = jax.random.normal(kx, (N, C, H, W), dtype=jnp.float32)
    gamma = 1.0 + 0.1 * jax.random.normal(kg, (C,), dtype=jnp.float32)
    beta = 0.1 * jax.random.normal(kb, (C,), dtype=jnp.float32)
    out = jax.block_until_ready(batch_norm_relu(x, gamma, beta))
    assert out.shape == (N, C, H, W)
    assert jnp.allclose(out, ref_bn_relu(x, gamma, beta), atol=1e-4, rtol=1e-4)

    # Case 2: same input through the two-pass (stats + apply) path.
    out2 = jax.block_until_ready(batch_norm_relu(x, gamma, beta, force_two_pass=True))
    assert jnp.allclose(out2, ref_bn_relu(x, gamma, beta), atol=1e-4, rtol=1e-4)

    # Case 3: spatial size not a multiple of 128 + channel split + masked tail
    # tiles (tiny tile target forces the cdiv grid on a small tensor).
    N3, C3, H3, W3 = 2, 16, 16, 12          # HW = 192 -> 2 tiles of 128, masked tail
    x_3 = jax.random.normal(kx2, (N3, C3, H3, W3), dtype=jnp.float32)
    g_3 = 1.0 + 0.1 * jax.random.normal(kg, (C3,), dtype=jnp.float32)
    b_3 = 0.1 * jax.random.normal(kb, (C3,), dtype=jnp.float32)
    out3 = jax.block_until_ready(
        batch_norm_relu(x_3, g_3, b_3, force_two_pass=True, tile_target_bytes=2048))
    assert jnp.allclose(out3, ref_bn_relu(x_3, g_3, b_3), atol=1e-4, rtol=1e-4)

    print("KERNEL_OK")
</pallas_src>

<mosaic_0001>
module attributes {stable_mosaic.version = 11 : i64} {
  func.func @bn_fused_kernel(%arg0: i32, %arg1: memref<2x4x256xf32, #tpu.memory_space<vmem>>, %arg2: memref<4x1xf32, #tpu.memory_space<vmem>>, %arg3: memref<4x1xf32, #tpu.memory_space<vmem>>, %arg4: memref<2x4x256xf32, #tpu.memory_space<vmem>>) attributes {dimension_semantics = [#tpu.dimension_semantics<arbitrary>], iteration_bounds = array<i64: 1>, scalar_prefetch = 0 : i64, scratch_operands = 0 : i64, tpu.core_type = #tpu.core_type<tc>, window_params = [{pipeline_mode = #tpu.pipeline_mode<synchronous>, transform_indices = @transform_0, window_bounds = array<i64: 2, 4, 256>}, {pipeline_mode = #tpu.pipeline_mode<synchronous>, transform_indices = @transform_1, window_bounds = array<i64: 4, 1>}, {pipeline_mode = #tpu.pipeline_mode<synchronous>, transform_indices = @transform_2, window_bounds = array<i64: 4, 1>}, {pipeline_mode = #tpu.pipeline_mode<synchronous>, transform_indices = @transform_3, window_bounds = array<i64: 2, 4, 256>}]} {
    %c0 = arith.constant 0 : index
    %c0_0 = arith.constant 0 : index
    %c0_1 = arith.constant 0 : index
    %0 = vector.load %arg1[%c0, %c0_0, %c0_1] : memref<2x4x256xf32, #tpu.memory_space<vmem>>, vector<2x4x256xf32>
    %cst = arith.constant dense<0.000000e+00> : vector<4x256xf32>
    %1 = vector.multi_reduction <add>, %0, %cst [0] : vector<2x4x256xf32> to vector<4x256xf32>
    %cst_2 = arith.constant dense<0.000000e+00> : vector<4xf32>
    %2 = vector.multi_reduction <add>, %1, %cst_2 [1] : vector<4x256xf32> to vector<4xf32>
    %3 = vector.shape_cast %2 : vector<4xf32> to vector<4x1xf32>
    %4 = arith.mulf %0, %0 : vector<2x4x256xf32>
    %cst_3 = arith.constant dense<0.000000e+00> : vector<4x256xf32>
    %5 = vector.multi_reduction <add>, %4, %cst_3 [0] : vector<2x4x256xf32> to vector<4x256xf32>
    %cst_4 = arith.constant dense<0.000000e+00> : vector<4xf32>
    %6 = vector.multi_reduction <add>, %5, %cst_4 [1] : vector<4x256xf32> to vector<4xf32>
    %7 = vector.shape_cast %6 : vector<4xf32> to vector<4x1xf32>
    %cst_5 = arith.constant 0.001953125 : f32
    %8 = vector.broadcast %cst_5 : f32 to vector<4x1xf32>
    %9 = arith.mulf %3, %8 : vector<4x1xf32>
    %cst_6 = arith.constant 0.001953125 : f32
    %10 = vector.broadcast %cst_6 : f32 to vector<4x1xf32>
    %11 = arith.mulf %7, %10 : vector<4x1xf32>
    %12 = arith.mulf %9, %9 : vector<4x1xf32>
    %13 = arith.subf %11, %12 : vector<4x1xf32>
    %cst_7 = arith.constant 0.000000e+00 : f32
    %14 = vector.broadcast %cst_7 : f32 to vector<4x1xf32>
    %15 = arith.maximumf %13, %14 : vector<4x1xf32>
    %c0_8 = arith.constant 0 : index
    %c0_9 = arith.constant 0 : index
    %16 = vector.load %arg2[%c0_8, %c0_9] : memref<4x1xf32, #tpu.memory_space<vmem>>, vector<4x1xf32>
    %cst_10 = arith.constant 9.99999974E-6 : f32
    %17 = vector.broadcast %cst_10 : f32 to vector<4x1xf32>
    %18 = arith.addf %15, %17 : vector<4x1xf32>
    %19 = math.rsqrt %18 : vector<4x1xf32>
    %20 = arith.mulf %16, %19 : vector<4x1xf32>
    %c0_11 = arith.constant 0 : index
    %c0_12 = arith.constant 0 : index
    %21 = vector.load %arg3[%c0_11, %c0_12] : memref<4x1xf32, #tpu.memory_space<vmem>>, vector<4x1xf32>
    %22 = arith.mulf %9, %20 : vector<4x1xf32>
    %23 = arith.subf %21, %22 : vector<4x1xf32>
    %24 = vector.shape_cast %20 : vector<4x1xf32> to vector<1x4x1xf32>
    %25 = vector.broadcast %24 : vector<1x4x1xf32> to vector<2x4x256xf32>
    %26 = arith.mulf %0, %25 : vector<2x4x256xf32>
    %27 = vector.shape_cast %23 : vector<4x1xf32> to vector<1x4x1xf32>
    %28 = vector.broadcast %27 : vector<1x4x1xf32> to vector<2x4x256xf32>
    %29 = arith.addf %26, %28 : vector<2x4x256xf32>
    %cst_13 = arith.constant 0.000000e+00 : f32
    %30 = vector.broadcast %cst_13 : f32 to vector<2x4x256xf32>
    %31 = arith.maximumf %29, %30 : vector<2x4x256xf32>
    %c0_14 = arith.constant 0 : index
    %c0_15 = arith.constant 0 : index
    %c0_16 = arith.constant 0 : index
    %32 = vector.load %arg4[%c0_14, %c0_15, %c0_16] : memref<2x4x256xf32, #tpu.memory_space<vmem>>, vector<2x4x256xf32>
    tpu.vector_store %arg4[%c0_14, %c0_15, %c0_16], %31 {strides = array<i32>} : memref<2x4x256xf32, #tpu.memory_space<vmem>>, vector<2x4x256xf32>,
    return
  }
  func.func @transform_0(%arg0: i32) -> (i32, i32, i32) {
    %c0_i32 = arith.constant 0 : i32
    %c0_i32_0 = arith.constant 0 : i32
    %c0_i32_1 = arith.constant 0 : i32
    %c0_i32_2 = arith.constant 0 : i32
    return %c0_i32, %c0_i32_0, %c0_i32_1 : i32, i32, i32
  }
  func.func @transform_1(%arg0: i32) -> (i32, i32) {
    %c0_i32 = arith.constant 0 : i32
    %c0_i32_0 = arith.constant 0 : i32
    %c0_i32_1 = arith.constant 0 : i32
    return %c0_i32, %c0_i32_0 : i32, i32
  }
  func.func @transform_2(%arg0: i32) -> (i32, i32) {
    %c0_i32 = arith.constant 0 : i32
    %c0_i32_0 = arith.constant 0 : i32
    %c0_i32_1 = arith.constant 0 : i32
    return %c0_i32, %c0_i32_0 : i32, i32
  }
  func.func @transform_3(%arg0: i32) -> (i32, i32, i32) {
    %c0_i32 = arith.constant 0 : i32
    %c0_i32_0 = arith.constant 0 : i32
    %c0_i32_1 = arith.constant 0 : i32
    %c0_i32_2 = arith.constant 0 : i32
    return %c0_i32, %c0_i32_0, %c0_i32_1 : i32, i32, i32
  }
}

</mosaic_0001>

<bundles_post_ra>
// kernel: tpu_custom_call.1
= control target key start
LH: loop header
LB: loop body
LE: loop exit
PB: predicated region body
PF: predicated region fallthrough
CT: control target
= control target key end

     0   :  { %8 = vsyncpa [#allocation3], 0  ;;  %s263_s0 = inlined_call_operand.hbm [shape: f32[2,4,256], index: 0, kind: input, shape index: {}]   ;;  %s264_s1 = inlined_call_operand.vmem [shape: f32[4,1], index: 1, kind: input, shape index: {}]   ;;  %s265_s2 = inlined_call_operand.vmem [shape: f32[4,1], index: 2, kind: input, shape index: {}]   ;;  %s266_s3 = inlined_call_operand.hbm [shape: f32[2,4,256], index: 3, kind: output, shape index: {}]  }
   0x1   :  { %9 = vsyncpa [#allocation4], 0  ;;  %s189_s12 = smov [#allocation2]   ;;  %s141_s16 = scalar_lea.hbm %s263_s0, 256 }
   0x2   :  { %s15_s13 = sshll.u32 %s189_s12, 4  ;;  %p142_p0 = scmp.ne.s32.totalorder %s263_s0, %s141_s16  ;;  %s16_s13 = int_to_ptr.vmem [resolvable:$true] %s15_s13 }
   0x3   :  { %p145_p1 = scmp.lt.u32.totalorder %s141_s16, %s263_s0 }
   0x5   :  { %p147_p2 = pnand %p145_p1, %p142_p0 }
   0x7   :  { %150 = shalt.err (!%p147_p2)
}
   0x8   :  { %s151_s21 = scalar_lea.vmem %s16_s13, 256  ;;  %p156_p4 = scmp.lt.s32.totalorder %s16_s13, %s16_s13 }
   0x9   :  { %p152_p3 = scmp.ne.s32.totalorder %s16_s13, %s151_s21  ;;  %p157_p5 = scmp.lt.s32.totalorder %s151_s21, %s151_s21 }
   0xb   :  { %p158_p6 = por %p157_p5, %p156_p4 }
   0xd   :  { %p159_p7 = pnand %p158_p6, %p152_p3 }
   0xf   :  { %162 = shalt.err (!%p159_p7)
}
  0x10   :  { %s190_s22 = smov 128   ;;  %s191_s23 = smov 8  }
  0x11   :  { %21 = dma.hbm_to_vmem [thread:$0]  %s263_s0, 256, %s16_s13, [#allocation3], %s190_s22, %s190_s22, %s191_s23  }
  0x12   :  { %185 = dma.done.wait [#allocation3], 256  }
  0x13   :  { %186 = vsyncadd [#allocation3], 4294967040  ;;  %vm37_vm0 = vcmask 1043456   ;;  %v29_v0 = vld [vmem:[#allocation2] sm:$0xff]  ;;  %v30_v1 = vld [vmem:[#allocation2 + $0x8] sm:$0xff]  ;;  %v192_v26 = vmov 0   ;;  %v87_v43 = vlaneseq }
  0x14   :  { %v33_v2 = vcombine.high %v29_v0, %v29_v0  ;;  %v34_v3 = vcombine.high %v30_v1, %v30_v1  ;;  %v38_v4 = vsel %vm37_vm0, %v29_v0, 0.0  ;;  %v39_v5 = vsel %vm37_vm0, %v30_v1, 0.0  ;;  %135 = vset.pattern.permute.xlu1 %v192_v26  ;;  %136 = vset.pattern.permute.xlu0 %v192_v26  ;;  %v73_v35 = vld [vmem:[%s264_s1] sm:$0xf]  ;;  %s194_s1 = smov [#allocation5]  }
  0x15   :  { %v40_v6 = vadd.f32 %v39_v5, %v38_v4  ;;  %v49_v7 = vmul.f32 %v29_v0, %v29_v0  ;;  %v50_v8 = vmul.f32 %v30_v1, %v30_v1  ;;  %v77_v38 = vld [vmem:[%s265_s2] sm:$0xf]  ;;  %v193_v41 = vmov 839922192   ;;  %s117_s29 = sshll.u32 %s194_s1, 4  ;;  %s118_s29 = int_to_ptr.vmem [resolvable:$true] %s117_s29 }
  0x16   :  { %v41_v9 = vsel %vm37_vm0, %v33_v2, 0.0  ;;  %v42_v10 = vsel %vm37_vm0, %v34_v3, 0.0  ;;  %v85_v42 = vunpack.c.l.s4 %v193_v41  ;;  %v88_v45 = vshrl.u32 %v87_v43, 7  ;;  %s163_s2 = scalar_lea.vmem %s118_s29, 256  ;;  %p168_p9 = scmp.lt.s32.totalorder %s118_s29, %s118_s29 }
  0x17   :  { %v43_v11 = vadd.f32 %v42_v10, %v41_v9  ;;  %v44_v12 = vsel %vm37_vm0, %v40_v6, 0.0  ;;  %v53_v13 = vcombine.high %v49_v7, %v49_v7  ;;  %v54_v14 = vcombine.high %v50_v8, %v50_v8  ;;  %p164_p8 = scmp.ne.s32.totalorder %s118_s29, %s163_s2  ;;  %p169_p10 = scmp.lt.s32.totalorder %s163_s2, %s163_s2 }
  0x18   :  { %v57_v15 = vsel %vm37_vm0, %v49_v7, 0.0  ;;  %v58_v16 = vsel %vm37_vm0, %v50_v8, 0.0  ;;  %v86_v44 = vunpack.c.0.s8 %v85_v42 }
  0x19   :  { %v45_v17 = vsel %vm37_vm0, %v43_v11, 0.0  ;;  %v59_v18 = vadd.f32 %v58_v16, %v57_v15  ;;  %v60_v19 = vsel %vm37_vm0, %v53_v13, 0.0  ;;  %v61_v20 = vsel %vm37_vm0, %v54_v14, 0.0  ;;  %p170_p11 = por %p169_p10, %p168_p9 }
  0x1a   :  { %v46_v21 = vadd.f32 %v45_v17, %v44_v12  ;;  %v62_v22 = vadd.f32 %v61_v20, %v60_v19  ;;  %v89_v46 = vsub.s32 %v86_v44, %v88_v45 }
  0x1b   :  { %v63_v23 = vsel %vm37_vm0, %v59_v18, 0.0  ;;  %p171_p12 = pnand %p170_p11, %p164_p8 }
  0x1c   :  { %47 = vadd.xlane.f32.xlu0 %v46_v21  ;;  %v64_v24 = vsel %vm37_vm0, %v62_v22, 0.0 }
  0x1d   :  { %v65_v25 = vadd.f32 %v64_v24, %v63_v23 }
  0x20   :  { %66 = vadd.xlane.f32.xlu0 %v65_v25 }
  0xa9   :  { %v48_v27 = vpop.xlane.xlu0 %47 }
  0xaa   :  { %v68_v28 = vmul.f32 0.001953125, %v48_v27 }
  0xac   :  { %v70_v30 = vmul.f32 %v68_v28, %v68_v28 }
  0xad   :  { %v67_v29 = vpop.xlane.xlu0 %66 }
  0xae   :  { %v69_v31 = vmul.f32 0.001953125, %v67_v29 }
  0xb0   :  { %v71_v32 = vsub.f32 %v69_v31, %v70_v30 }
  0xb2   :  { %v72_v33 = vmax.f32 %v71_v32, 0.0 }
  0xb4   :  { %v74_v34 = vadd.f32 1e-05, %v72_v33 }
  0xb6   :  { %139 = vrsqrt.f32 %v74_v34 }
  0xc0   :  { %v140_v36 = vpop.eup %139 }
  0xc1   :  { %v76_v37 = vmul.f32 %v140_v36, %v73_v35 }
  0xc3   :  { %82 = vperm.xlu1 %135, %v76_v37   ;;  %v78_v39 = vmul.f32 %v76_v37, %v68_v28 }
  0xc5   :  { %v79_v40 = vsub.f32 %v77_v38, %v78_v39 }
  0xc7   :  { %96 = vperm.xlu1 %135, %v79_v40  }
 0x142   :  { %v83_v47 = vpop.permute.xlu1 %82 }
 0x143   :  { %v90_v48 = vrot.slane %v83_v47, %v89_v46 }
 0x145   :  { %v92_v50 = vmul.f32 %v90_v48, %v29_v0  ;;  %v93_v51 = vmul.f32 %v90_v48, %v30_v1 }
 0x146   :  { %v97_v49 = vpop.permute.xlu1 %96 }
 0x147   :  { %v104_v52 = vrot.slane %v97_v49, %v89_v46 }
 0x149   :  { %v106_v53 = vadd.f32 %v104_v52, %v92_v50  ;;  %v107_v54 = vadd.f32 %v104_v52, %v93_v51 }
 0x14b   :  { %v108_v55 = vmax.f32 %v106_v53, 0.0  ;;  %v109_v56 = vmax.f32 %v107_v54, 0.0 }
 0x14d   :  { %110 = vst [vmem:[#allocation5] sm:$0xff] %v108_v55  ;;  %111 = vst [vmem:[#allocation5 + $0x8] sm:$0xff] %v109_v56 }
 0x14e   :  { %174 = shalt.err (!%p171_p12)
}
 0x14f   :  { %s175_s5 = scalar_lea.hbm %s266_s3, 256 }
 0x150   :  { %p176_p13 = scmp.ne.s32.totalorder %s266_s3, %s175_s5  ;;  %p179_p0 = scmp.lt.u32.totalorder %s175_s5, %s266_s3 }
 0x152   :  { %p181_p1 = pnand %p179_p0, %p176_p13 }
 0x154   :  { %184 = shalt.err (!%p181_p1)
}
 0x155   :  { %123 = dma.vmem_to_hbm [thread:$0]  %s118_s29, 256, %s266_s3, [#allocation4], %s190_s22, %s190_s22, %s191_s23  }
 0x156   :  { %187 = dma.done.wait [#allocation4], 256  }
 0x157   :  { %188 = vsyncadd [#allocation4], 4294967040 }
 0x158   :  { %127 = vsyncpa [#allocation3], 1 }
 0x159   :  { %128 = vsyncpa [#allocation4], 1 }

</bundles_post_ra>
